<compile_context>
chip_gen: v6e
topology: v6e:2x2x1
jax: 0.10.0
libtpu: 0.0.40
codegen_flags: <defaults>
</compile_context>

<pallas_src>
import math
import functools

import jax
import jax.numpy as jnp
from jax import lax
from jax.experimental import pallas as pl
from jax.experimental.pallas import tpu as pltpu


def _vmem_limit_bytes():
    # Generation-aware scoped-VMEM budget: ~3/4 of physical VMEM
    # (v5e/v6e: 96 MiB of 128 MiB; v7x: 48 MiB of 64 MiB). Never the full
    # capacity -- Mosaic needs headroom for double buffering / scratch.
    try:
        cap = pltpu.get_tpu_info().vmem_capacity_bytes
        return min(96 * 1024 * 1024, max(32 * 1024 * 1024, (cap * 3) // 4))
    except Exception:
        return 64 * 1024 * 1024


def _layer_norm(x, w, eps=1e-5):
    mu = jnp.mean(x, axis=-1, keepdims=True)
    var = jnp.mean((x - mu) ** 2, axis=-1, keepdims=True)
    return (x - mu) * lax.rsqrt(var + eps) * w


def _new_gelu(x):
    c = math.sqrt(2.0 / math.pi)
    return 0.5 * x * (1.0 + jnp.tanh(c * (x + 0.044715 * x * x * x)))


# --------------------------------------------------------------------------
# Kernel 1: LN1 + fused QKV projection, emitted head-major (B, H, T, Dh) bf16.
# attn_scale is already folded into the Q columns of wqkv/bqkv.
# --------------------------------------------------------------------------
def ln_qkv_kernel(x_ref, ln1w_ref, wqkv_ref, bqkv_ref,
                  q_ref, k_ref, v_ref, *, n_head):
    x = x_ref[...]                                   # (tq, C) f32
    C = x.shape[-1]
    Dh = C // n_head

    h = _layer_norm(x, ln1w_ref[...])
    # One big (tq,C)@(C,3C) bf16 matmul (full MXU contraction), f32 accumulate.
    qkv = jnp.dot(h.astype(jnp.bfloat16), wqkv_ref[...],
                  preferred_element_type=jnp.float32) + bqkv_ref[...]
    qkv = qkv.astype(jnp.bfloat16)                   # single cast pass

    # Head split once here (not per kv-step inside attention).
    # TODO(synk): for Dh=64, pack two heads per 128-lane group (bitcast) to make
    # these stores fully lane-dense; with Dh>=128 they already are.
    for hh in range(n_head):
        q_ref[hh] = qkv[:, hh * Dh:(hh + 1) * Dh]
        k_ref[hh] = qkv[:, C + hh * Dh:C + (hh + 1) * Dh]
        v_ref[hh] = qkv[:, 2 * C + hh * Dh:2 * C + (hh + 1) * Dh]


# --------------------------------------------------------------------------
# Kernel 2: causal flash attention (online softmax), Hblk heads per grid step.
# grid = (B, H//Hblk, nQ, nK); kv axis last and "arbitrary" (accumulator axis).
# Output is lane-dense (B, T, C).
# --------------------------------------------------------------------------
def flash_attn_kernel(q_ref, k_ref, v_ref, o_ref,
                      m_ref, l_ref, acc_ref, *, tq, tk):
    qi = pl.program_id(2)
    ki = pl.program_id(3)
    hblk, _, Dh = q_ref.shape

    q_start = qi * tq
    q_last = q_start + tq - 1
    k_start = ki * tk
    k_last = k_start + tk - 1
    last_needed = q_last // tk           # last kv tile on/below the diagonal

    @pl.when(ki == 0)
    def _init():
        m_ref[...] = jnp.full(m_ref.shape, -jnp.inf, m_ref.dtype)
        l_ref[...] = jnp.zeros(l_ref.shape, l_ref.dtype)
        acc_ref[...] = jnp.zeros(acc_ref.shape, acc_ref.dtype)

    def _update(apply_mask):
        q = q_ref[...]                   # (Hblk, tq, Dh) bf16 (scale pre-folded)
        k = k_ref[...]                   # (Hblk, tk, Dh) bf16
        s = jnp.einsum('hqd,hkd->hqk', q, k,
                       preferred_element_type=jnp.float32)   # (Hblk, tq, tk)
        if apply_mask:                   # only for diagonal-straddling tiles
            row = q_start + lax.broadcasted_iota(jnp.int32, (tq, tk), 0)
            col = k_start + lax.broadcasted_iota(jnp.int32, (tq, tk), 1)
            s = jnp.where((col <= row)[None, :, :], s, -jnp.inf)
        m_prev = m_ref[...]
        m_new = jnp.maximum(m_prev, jnp.max(s, axis=-1, keepdims=True))
        alpha = jnp.exp(m_prev - m_new)  # kv tile 0 gives finite row max -> no NaN
        p = jnp.exp(s - m_new)
        l_ref[...] = alpha * l_ref[...] + jnp.sum(p, axis=-1, keepdims=True)
        acc_ref[...] = alpha * acc_ref[...] + jnp.einsum(
            'hqk,hkd->hqd', p.astype(v_ref.dtype), v_ref[...],
            preferred_element_type=jnp.float32)
        m_ref[...] = m_new

    needed = ki <= last_needed           # tile-level causal skip
    straddles = k_last > q_start         # mask only needed when straddling

    @pl.when(needed & straddles)
    def _masked():
        _update(True)

    @pl.when(needed & jnp.logical_not(straddles))
    def _unmasked():
        _update(False)

    # Write the output at the last kv tile this q tile actually needs
    # (later tiles are skipped, so we cannot wait for the final kv index).
    @pl.when(ki == last_needed)
    def _finalize():
        out = acc_ref[...] / l_ref[...]          # exact normalization
        for h in range(hblk):                    # lane-dense (tq, Hblk*Dh) block
            o_ref[:, h * Dh:(h + 1) * Dh] = out[h].astype(o_ref.dtype)


# --------------------------------------------------------------------------
# Kernel 3: single full-depth output projection + residual,
#           LN2 + MLP(new_gelu) + residual.
# --------------------------------------------------------------------------
def proj_mlp_kernel(x_ref, a_ref, pw_ref, pb_ref, ln2w_ref,
                    w1_ref, b1_ref, w2_ref, b2_ref, o_ref):
    x = x_ref[...]                                   # (tq, C) f32
    a = a_ref[...]                                   # (tq, C) bf16 attn output

    x1 = x + jnp.dot(a, pw_ref[...],
                     preferred_element_type=jnp.float32) + pb_ref[...]

    h2 = _layer_norm(x1, ln2w_ref[...])
    m = jnp.dot(h2.astype(jnp.bfloat16), w1_ref[...],
                preferred_element_type=jnp.float32) + b1_ref[...]
    m = _new_gelu(m)
    y = x1 + jnp.dot(m.astype(jnp.bfloat16), w2_ref[...],
                     preferred_element_type=jnp.float32) + b2_ref[...]
    o_ref[...] = y.astype(o_ref.dtype)


# --------------------------------------------------------------------------
# Wrapper
# --------------------------------------------------------------------------
def _const_spec(shape):
    nd = len(shape)
    return pl.BlockSpec(shape, lambda *_args, _nd=nd: (0,) * _nd)


def _largest_divisor_leq(n, target):
    t = max(1, min(n, target))
    while n % t:
        t -= 1
    return t


def _pick_hblk(H, Dh):
    # Largest head group (<=8) whose lane footprint is a multiple of 128 so the
    # attention output block is lane-dense; otherwise fall back to all heads
    # (footprint == C, always a valid full-dim block).
    for hb in range(min(H, 8), 0, -1):
        if H % hb == 0 and (hb * Dh) % 128 == 0:
            return hb
    return H


def casual_block(x, params, n_head, *, tq=None, tk=None):
    B, T, C = x.shape
    assert C % n_head == 0
    H = n_head
    Dh = C // H

    (ln1_w, wqkv, bqkv, pw, pb, ln2_w, w1, b1, w2, b2) = params

    # Fold attention scale into the Q columns of the QKV projection at prep
    # time (free) -- removes per-element score scaling from the hot loop.
    # TODO(synk): confirm 1/sqrt(B) (vs the usual 1/sqrt(Dh)) is intentional.
    q_scale = 1.0 / math.sqrt(B)
    wqkv_f = wqkv.astype(jnp.float32)
    wqkv_s = jnp.concatenate([wqkv_f[:, :C] * q_scale, wqkv_f[:, C:]],
                             axis=1).astype(wqkv.dtype)
    bqkv_s = jnp.concatenate([bqkv[:, :C] * q_scale, bqkv[:, C:]], axis=1)

    if tq is None:
        tq = _largest_divisor_leq(T, 256)
    if tk is None:
        tk = _largest_divisor_leq(T, 512)
    assert T % tq == 0 and T % tk == 0
    nT = T // tq
    nK = T // tk
    hblk = _pick_hblk(H, Dh)
    nHg = H // hblk

    vmem = _vmem_limit_bytes()
    cp2 = pltpu.CompilerParams(dimension_semantics=("parallel", "parallel"),
                               vmem_limit_bytes=vmem)

    # ---- Kernel 1: LN1 + QKV projection -> head-major bf16 q/k/v ----
    q_hm, k_hm, v_hm = pl.pallas_call(
        functools.partial(ln_qkv_kernel, n_head=H),
        out_shape=[jax.ShapeDtypeStruct((B, H, T, Dh), jnp.bfloat16)] * 3,
        grid=(B, nT),
        in_specs=[
            pl.BlockSpec((None, tq, C), lambda b, t: (b, t, 0)),   # x tile
            _const_spec(ln1_w.shape),
            _const_spec(wqkv_s.shape),
            _const_spec(bqkv_s.shape),
        ],
        out_specs=[pl.BlockSpec((None, H, tq, Dh), lambda b, t: (b, 0, t, 0))] * 3,
        compiler_params=cp2,
    )(x, ln1_w, wqkv_s, bqkv_s)

    # ---- Kernel 2: causal flash attention, Hblk heads per step ----
    def q_map(b, hg, qi, ki):
        return (b, hg, qi, 0)

    def kv_map(b, hg, qi, ki):
        # Clamp to the causal diagonal: skipped (above-diagonal) kv steps map to
        # the already-resident block, so they are never re-fetched from HBM.
        last = (qi * tq + tq - 1) // tk
        return (b, hg, jnp.minimum(ki, last), 0)

    attn = pl.pallas_call(
        functools.partial(flash_attn_kernel, tq=tq, tk=tk),
        out_shape=jax.ShapeDtypeStruct((B, T, C), jnp.bfloat16),
        grid=(B, nHg, nT, nK),
        in_specs=[
            pl.BlockSpec((None, hblk, tq, Dh), q_map),
            pl.BlockSpec((None, hblk, tk, Dh), kv_map),
            pl.BlockSpec((None, hblk, tk, Dh), kv_map),
        ],
        out_specs=pl.BlockSpec((None, tq, hblk * Dh),
                               lambda b, hg, qi, ki: (b, qi, hg)),
        scratch_shapes=[
            pltpu.VMEM((hblk, tq, 1), jnp.float32),    # running max
            pltpu.VMEM((hblk, tq, 1), jnp.float32),    # running denom
            pltpu.VMEM((hblk, tq, Dh), jnp.float32),   # running accumulator
        ],
        compiler_params=pltpu.CompilerParams(
            dimension_semantics=("parallel", "parallel", "parallel", "arbitrary"),
            vmem_limit_bytes=vmem),
    )(q_hm, k_hm, v_hm)

    # ---- Kernel 3: proj + residual, LN2 + MLP + residual ----
    # TODO(synk): for very large C on v7x (64 MiB VMEM), tile w1/w2 over the 4C
    # hidden axis (extra grid axis + accumulator) instead of full residency.
    y = pl.pallas_call(
        proj_mlp_kernel,
        out_shape=jax.ShapeDtypeStruct((B, T, C), x.dtype),
        grid=(B, nT),
        in_specs=[
            pl.BlockSpec((None, tq, C), lambda b, t: (b, t, 0)),   # x tile
            pl.BlockSpec((None, tq, C), lambda b, t: (b, t, 0)),   # attn tile
            _const_spec(pw.shape),
            _const_spec(pb.shape),
            _const_spec(ln2_w.shape),
            _const_spec(w1.shape),
            _const_spec(b1.shape),
            _const_spec(w2.shape),
            _const_spec(b2.shape),
        ],
        out_specs=pl.BlockSpec((None, tq, C), lambda b, t: (b, t, 0)),
        compiler_params=cp2,
    )(x, attn, pw, pb, ln2_w, w1, b1, w2, b2)

    return y


# --------------------------------------------------------------------------
# Parameters (weights pre-transposed to (in, out); matmul weights stored bf16).
# --------------------------------------------------------------------------
def make_params(key, C, n_head):
    ks = jax.random.split(key, 8)
    s = 0.02
    ln1_w = jnp.ones((1, C), jnp.float32)
    wqkv = (jax.random.normal(ks[0], (C, 3 * C), jnp.float32) * s).astype(jnp.bfloat16)
    bqkv = jax.random.normal(ks[1], (1, 3 * C), jnp.float32) * s
    pw = (jax.random.normal(ks[2], (C, C), jnp.float32) * s).astype(jnp.bfloat16)
    pb = jax.random.normal(ks[3], (1, C), jnp.float32) * s
    ln2_w = jnp.ones((1, C), jnp.float32)
    w1 = (jax.random.normal(ks[4], (C, 4 * C), jnp.float32) * s).astype(jnp.bfloat16)
    b1 = jax.random.normal(ks[5], (1, 4 * C), jnp.float32) * s
    w2 = (jax.random.normal(ks[6], (4 * C, C), jnp.float32) * s).astype(jnp.bfloat16)
    b2 = jnp.zeros((1, C), jnp.float32)
    return (ln1_w, wqkv, bqkv, pw, pb, ln2_w, w1, b1, w2, b2)


# Pure-JAX reference (same bf16-stored weights upcast to f32) for a sanity check.
def reference_block(x, params, n_head):
    ln1_w, wqkv, bqkv, pw, pb, ln2_w, w1, b1, w2, b2 = [
        p.astype(jnp.float32) for p in params]
    B, T, C = x.shape
    Dh = C // n_head
    scale = 1.0 / math.sqrt(B)

    def ln(v, w):
        mu = v.mean(-1, keepdims=True)
        var = ((v - mu) ** 2).mean(-1, keepdims=True)
        return (v - mu) / jnp.sqrt(var + 1e-5) * w

    h = ln(x, ln1_w)
    qkv = h @ wqkv + bqkv
    q, k, v = qkv[..., :C], qkv[..., C:2 * C], qkv[..., 2 * C:]
    q = q.reshape(B, T, n_head, Dh).transpose(0, 2, 1, 3)
    k = k.reshape(B, T, n_head, Dh).transpose(0, 2, 1, 3)
    v = v.reshape(B, T, n_head, Dh).transpose(0, 2, 1, 3)
    s = jnp.einsum('bhqd,bhkd->bhqk', q, k) * scale
    mask = jnp.tril(jnp.ones((T, T), bool))
    s = jnp.where(mask, s, -jnp.inf)
    p = jax.nn.softmax(s, axis=-1)
    a = jnp.einsum('bhqk,bhkd->bhqd', p, v)
    a = a.transpose(0, 2, 1, 3).reshape(B, T, C)
    x1 = x + a @ pw + pb
    h2 = ln(x1, ln2_w)
    m = h2 @ w1 + b1
    m = 0.5 * m * (1.0 + jnp.tanh(math.sqrt(2.0 / math.pi) * (m + 0.044715 * m ** 3)))
    return x1 + m @ w2 + b2


if __name__ == "__main__":
    B, T, C, H = 2, 8, 32, 4
    key = jax.random.PRNGKey(0)
    kx, kp = jax.random.split(key)
    x = jax.random.normal(kx, (B, T, C), jnp.float32)
    params = make_params(kp, C, H)

    out = casual_block(x, params, n_head=H)
    out = jax.block_until_ready(out)

    assert out.shape == (B, T, C) and out.dtype == jnp.float32
    assert bool(jnp.all(jnp.isfinite(out)))

    ref = reference_block(x, params, H)
    max_err = float(jnp.max(jnp.abs(out - ref)))
    assert max_err < 5e-2, f"max abs err {max_err}"

    print("KERNEL_OK")
</pallas_src>

<mosaic_0001>
module attributes {stable_mosaic.version = 11 : i64} {
  func.func @ln_qkv_kernel(%arg0: i32, %arg1: i32, %arg2: memref<1x8x32xf32, #tpu.memory_space<vmem>>, %arg3: memref<1x32xf32, #tpu.memory_space<vmem>>, %arg4: memref<32x96xbf16, #tpu.memory_space<vmem>>, %arg5: memref<1x96xf32, #tpu.memory_space<vmem>>, %arg6: memref<1x4x8x8xbf16, #tpu.memory_space<vmem>>, %arg7: memref<1x4x8x8xbf16, #tpu.memory_space<vmem>>, %arg8: memref<1x4x8x8xbf16, #tpu.memory_space<vmem>>) attributes {dimension_semantics = [#tpu.dimension_semantics<parallel>, #tpu.dimension_semantics<parallel>], iteration_bounds = array<i64: 2, 1>, scalar_prefetch = 0 : i64, scratch_operands = 0 : i64, tpu.core_type = #tpu.core_type<tc>, window_params = [{transform_indices = @transform_0, window_bounds = array<i64: 1, 8, 32>}, {pipeline_mode = #tpu.pipeline_mode<synchronous>, transform_indices = @transform_1, window_bounds = array<i64: 1, 32>}, {pipeline_mode = #tpu.pipeline_mode<synchronous>, transform_indices = @transform_2, window_bounds = array<i64: 32, 96>}, {pipeline_mode = #tpu.pipeline_mode<synchronous>, transform_indices = @transform_3, window_bounds = array<i64: 1, 96>}, {transform_indices = @transform_4, window_bounds = array<i64: 1, 4, 8, 8>}, {transform_indices = @transform_5, window_bounds = array<i64: 1, 4, 8, 8>}, {transform_indices = @transform_6, window_bounds = array<i64: 1, 4, 8, 8>}]} {
    %c0 = arith.constant 0 : index
    %c0_0 = arith.constant 0 : index
    %c0_1 = arith.constant 0 : index
    %0 = vector.load %arg2[%c0, %c0_0, %c0_1] : memref<1x8x32xf32, #tpu.memory_space<vmem>>, vector<1x8x32xf32>
    %1 = vector.shape_cast %0 : vector<1x8x32xf32> to vector<8x32xf32>
    %c0_2 = arith.constant 0 : index
    %c0_3 = arith.constant 0 : index
    %2 = vector.load %arg3[%c0_2, %c0_3] : memref<1x32xf32, #tpu.memory_space<vmem>>, vector<1x32xf32>
    %cst = arith.constant dense<0.000000e+00> : vector<8xf32>
    %3 = vector.multi_reduction <add>, %1, %cst [1] : vector<8x32xf32> to vector<8xf32>
    %4 = vector.shape_cast %3 : vector<8xf32> to vector<8x1xf32>
    %cst_4 = arith.constant 3.200000e+01 : f32
    %5 = vector.broadcast %cst_4 : f32 to vector<8x1xf32>
    %6 = arith.divf %4, %5 : vector<8x1xf32>
    %7 = vector.broadcast %6 : vector<8x1xf32> to vector<8x32xf32>
    %8 = arith.subf %1, %7 : vector<8x32xf32>
    %9 = arith.mulf %8, %8 : vector<8x32xf32>
    %cst_5 = arith.constant dense<0.000000e+00> : vector<8xf32>
    %10 = vector.multi_reduction <add>, %9, %cst_5 [1] : vector<8x32xf32> to vector<8xf32>
    %11 = vector.shape_cast %10 : vector<8xf32> to vector<8x1xf32>
    %cst_6 = arith.constant 3.200000e+01 : f32
    %12 = vector.broadcast %cst_6 : f32 to vector<8x1xf32>
    %13 = arith.divf %11, %12 : vector<8x1xf32>
    %14 = vector.broadcast %6 : vector<8x1xf32> to vector<8x32xf32>
    %15 = arith.subf %1, %14 : vector<8x32xf32>
    %cst_7 = arith.constant 9.99999974E-6 : f32
    %16 = vector.broadcast %cst_7 : f32 to vector<8x1xf32>
    %17 = arith.addf %13, %16 : vector<8x1xf32>
    %18 = math.rsqrt %17 : vector<8x1xf32>
    %19 = vector.broadcast %18 : vector<8x1xf32> to vector<8x32xf32>
    %20 = arith.mulf %15, %19 : vector<8x32xf32>
    %21 = vector.broadcast %2 : vector<1x32xf32> to vector<8x32xf32>
    %22 = arith.mulf %20, %21 : vector<8x32xf32>
    %23 = arith.truncf %22 : vector<8x32xf32> to vector<8x32xbf16>
    %c0_8 = arith.constant 0 : index
    %c0_9 = arith.constant 0 : index
    %24 = vector.load %arg4[%c0_8, %c0_9] : memref<32x96xbf16, #tpu.memory_space<vmem>>, vector<32x96xbf16>
    %cst_10 = arith.constant dense<0.000000e+00> : vector<8x96xf32>
    %25 = tpu.matmul %23, %24, %cst_10 {dimension_numbers = #tpu.dot_dimension_numbers<[1], [0], [0], [1], [0, 0, 1, 1], [], []>} : vector<8x32xbf16>, vector<32x96xbf16>, vector<8x96xf32> -> vector<8x96xf32>
    %c0_11 = arith.constant 0 : index
    %c0_12 = arith.constant 0 : index
    %26 = vector.load %arg5[%c0_11, %c0_12] : memref<1x96xf32, #tpu.memory_space<vmem>>, vector<1x96xf32>
    %27 = vector.broadcast %26 : vector<1x96xf32> to vector<8x96xf32>
    %28 = arith.addf %25, %27 : vector<8x96xf32>
    %29 = arith.truncf %28 : vector<8x96xf32> to vector<8x96xbf16>
    %30 = vector.extract_strided_slice %29 {offsets = [0, 0], sizes = [8, 8], strides = [1, 1]} : vector<8x96xbf16> to vector<8x8xbf16>
    %c0_13 = arith.constant 0 : index
    %c0_14 = arith.constant 0 : index
    %c0_15 = arith.constant 0 : index
    %c0_16 = arith.constant 0 : index
    %31 = vector.load %arg6[%c0_13, %c0_14, %c0_15, %c0_16] : memref<1x4x8x8xbf16, #tpu.memory_space<vmem>>, vector<1x1x8x8xbf16>
    %32 = vector.shape_cast %31 : vector<1x1x8x8xbf16> to vector<8x8xbf16>
    %33 = vector.shape_cast %30 : vector<8x8xbf16> to vector<1x1x8x8xbf16>
    tpu.vector_store %arg6[%c0_13, %c0_14, %c0_15, %c0_16], %33 {strides = array<i32>} : memref<1x4x8x8xbf16, #tpu.memory_space<vmem>>, vector<1x1x8x8xbf16>,
    %34 = vector.extract_strided_slice %29 {offsets = [0, 32], sizes = [8, 8], strides = [1, 1]} : vector<8x96xbf16> to vector<8x8xbf16>
    %c0_17 = arith.constant 0 : index
    %c0_18 = arith.constant 0 : index
    %c0_19 = arith.constant 0 : index
    %c0_20 = arith.constant 0 : index
    %35 = vector.load %arg7[%c0_17, %c0_18, %c0_19, %c0_20] : memref<1x4x8x8xbf16, #tpu.memory_space<vmem>>, vector<1x1x8x8xbf16>
    %36 = vector.shape_cast %35 : vector<1x1x8x8xbf16> to vector<8x8xbf16>
    %37 = vector.shape_cast %34 : vector<8x8xbf16> to vector<1x1x8x8xbf16>
    tpu.vector_store %arg7[%c0_17, %c0_18, %c0_19, %c0_20], %37 {strides = array<i32>} : memref<1x4x8x8xbf16, #tpu.memory_space<vmem>>, vector<1x1x8x8xbf16>,
    %38 = vector.extract_strided_slice %29 {offsets = [0, 64], sizes = [8, 8], strides = [1, 1]} : vector<8x96xbf16> to vector<8x8xbf16>
    %c0_21 = arith.constant 0 : index
    %c0_22 = arith.constant 0 : index
    %c0_23 = arith.constant 0 : index
    %c0_24 = arith.constant 0 : index
    %39 = vector.load %arg8[%c0_21, %c0_22, %c0_23, %c0_24] : memref<1x4x8x8xbf16, #tpu.memory_space<vmem>>, vector<1x1x8x8xbf16>
    %40 = vector.shape_cast %39 : vector<1x1x8x8xbf16> to vector<8x8xbf16>
    %41 = vector.shape_cast %38 : vector<8x8xbf16> to vector<1x1x8x8xbf16>
    tpu.vector_store %arg8[%c0_21, %c0_22, %c0_23, %c0_24], %41 {strides = array<i32>} : memref<1x4x8x8xbf16, #tpu.memory_space<vmem>>, vector<1x1x8x8xbf16>,
    %42 = vector.extract_strided_slice %29 {offsets = [0, 8], sizes = [8, 8], strides = [1, 1]} : vector<8x96xbf16> to vector<8x8xbf16>
    %c0_25 = arith.constant 0 : index
    %c1 = arith.constant 1 : index
    %c0_26 = arith.constant 0 : index
    %c0_27 = arith.constant 0 : index
    %43 = vector.load %arg6[%c0_25, %c1, %c0_26, %c0_27] : memref<1x4x8x8xbf16, #tpu.memory_space<vmem>>, vector<1x1x8x8xbf16>
    %44 = vector.shape_cast %43 : vector<1x1x8x8xbf16> to vector<8x8xbf16>
    %45 = vector.shape_cast %42 : vector<8x8xbf16> to vector<1x1x8x8xbf16>
    tpu.vector_store %arg6[%c0_25, %c1, %c0_26, %c0_27], %45 {strides = array<i32>} : memref<1x4x8x8xbf16, #tpu.memory_space<vmem>>, vector<1x1x8x8xbf16>,
    %46 = vector.extract_strided_slice %29 {offsets = [0, 40], sizes = [8, 8], strides = [1, 1]} : vector<8x96xbf16> to vector<8x8xbf16>
    %c0_28 = arith.constant 0 : index
    %c1_29 = arith.constant 1 : index
    %c0_30 = arith.constant 0 : index
    %c0_31 = arith.constant 0 : index
    %47 = vector.load %arg7[%c0_28, %c1_29, %c0_30, %c0_31] : memref<1x4x8x8xbf16, #tpu.memory_space<vmem>>, vector<1x1x8x8xbf16>
    %48 = vector.shape_cast %47 : vector<1x1x8x8xbf16> to vector<8x8xbf16>
    %49 = vector.shape_cast %46 : vector<8x8xbf16> to vector<1x1x8x8xbf16>
    tpu.vector_store %arg7[%c0_28, %c1_29, %c0_30, %c0_31], %49 {strides = array<i32>} : memref<1x4x8x8xbf16, #tpu.memory_space<vmem>>, vector<1x1x8x8xbf16>,
    %50 = vector.extract_strided_slice %29 {offsets = [0, 72], sizes = [8, 8], strides = [1, 1]} : vector<8x96xbf16> to vector<8x8xbf16>
    %c0_32 = arith.constant 0 : index
    %c1_33 = arith.constant 1 : index
    %c0_34 = arith.constant 0 : index
    %c0_35 = arith.constant 0 : index
    %51 = vector.load %arg8[%c0_32, %c1_33, %c0_34, %c0_35] : memref<1x4x8x8xbf16, #tpu.memory_space<vmem>>, vector<1x1x8x8xbf16>
    %52 = vector.shape_cast %51 : vector<1x1x8x8xbf16> to vector<8x8xbf16>
    %53 = vector.shape_cast %50 : vector<8x8xbf16> to vector<1x1x8x8xbf16>
    tpu.vector_store %arg8[%c0_32, %c1_33, %c0_34, %c0_35], %53 {strides = array<i32>} : memref<1x4x8x8xbf16, #tpu.memory_space<vmem>>, vector<1x1x8x8xbf16>,
    %54 = vector.extract_strided_slice %29 {offsets = [0, 16], sizes = [8, 8], strides = [1, 1]} : vector<8x96xbf16> to vector<8x8xbf16>
    %c0_36 = arith.constant 0 : index
    %c2 = arith.constant 2 : index
    %c0_37 = arith.constant 0 : index
    %c0_38 = arith.constant 0 : index
    %55 = vector.load %arg6[%c0_36, %c2, %c0_37, %c0_38] : memref<1x4x8x8xbf16, #tpu.memory_space<vmem>>, vector<1x1x8x8xbf16>
    %56 = vector.shape_cast %55 : vector<1x1x8x8xbf16> to vector<8x8xbf16>
    %57 = vector.shape_cast %54 : vector<8x8xbf16> to vector<1x1x8x8xbf16>
    tpu.vector_store %arg6[%c0_36, %c2, %c0_37, %c0_38], %57 {strides = array<i32>} : memref<1x4x8x8xbf16, #tpu.memory_space<vmem>>, vector<1x1x8x8xbf16>,
    %58 = vector.extract_strided_slice %29 {offsets = [0, 48], sizes = [8, 8], strides = [1, 1]} : vector<8x96xbf16> to vector<8x8xbf16>
    %c0_39 = arith.constant 0 : index
    %c2_40 = arith.constant 2 : index
    %c0_41 = arith.constant 0 : index
    %c0_42 = arith.constant 0 : index
    %59 = vector.load %arg7[%c0_39, %c2_40, %c0_41, %c0_42] : memref<1x4x8x8xbf16, #tpu.memory_space<vmem>>, vector<1x1x8x8xbf16>
    %60 = vector.shape_cast %59 : vector<1x1x8x8xbf16> to vector<8x8xbf16>
    %61 = vector.shape_cast %58 : vector<8x8xbf16> to vector<1x1x8x8xbf16>
    tpu.vector_store %arg7[%c0_39, %c2_40, %c0_41, %c0_42], %61 {strides = array<i32>} : memref<1x4x8x8xbf16, #tpu.memory_space<vmem>>, vector<1x1x8x8xbf16>,
    %62 = vector.extract_strided_slice %29 {offsets = [0, 80], sizes = [8, 8], strides = [1, 1]} : vector<8x96xbf16> to vector<8x8xbf16>
    %c0_43 = arith.constant 0 : index
    %c2_44 = arith.constant 2 : index
    %c0_45 = arith.constant 0 : index
    %c0_46 = arith.constant 0 : index
    %63 = vector.load %arg8[%c0_43, %c2_44, %c0_45, %c0_46] : memref<1x4x8x8xbf16, #tpu.memory_space<vmem>>, vector<1x1x8x8xbf16>
    %64 = vector.shape_cast %63 : vector<1x1x8x8xbf16> to vector<8x8xbf16>
    %65 = vector.shape_cast %62 : vector<8x8xbf16> to vector<1x1x8x8xbf16>
    tpu.vector_store %arg8[%c0_43, %c2_44, %c0_45, %c0_46], %65 {strides = array<i32>} : memref<1x4x8x8xbf16, #tpu.memory_space<vmem>>, vector<1x1x8x8xbf16>,
    %66 = vector.extract_strided_slice %29 {offsets = [0, 24], sizes = [8, 8], strides = [1, 1]} : vector<8x96xbf16> to vector<8x8xbf16>
    %c0_47 = arith.constant 0 : index
    %c3 = arith.constant 3 : index
    %c0_48 = arith.constant 0 : index
    %c0_49 = arith.constant 0 : index
    %67 = vector.load %arg6[%c0_47, %c3, %c0_48, %c0_49] : memref<1x4x8x8xbf16, #tpu.memory_space<vmem>>, vector<1x1x8x8xbf16>
    %68 = vector.shape_cast %67 : vector<1x1x8x8xbf16> to vector<8x8xbf16>
    %69 = vector.shape_cast %66 : vector<8x8xbf16> to vector<1x1x8x8xbf16>
    tpu.vector_store %arg6[%c0_47, %c3, %c0_48, %c0_49], %69 {strides = array<i32>} : memref<1x4x8x8xbf16, #tpu.memory_space<vmem>>, vector<1x1x8x8xbf16>,
    %70 = vector.extract_strided_slice %29 {offsets = [0, 56], sizes = [8, 8], strides = [1, 1]} : vector<8x96xbf16> to vector<8x8xbf16>
    %c0_50 = arith.constant 0 : index
    %c3_51 = arith.constant 3 : index
    %c0_52 = arith.constant 0 : index
    %c0_53 = arith.constant 0 : index
    %71 = vector.load %arg7[%c0_50, %c3_51, %c0_52, %c0_53] : memref<1x4x8x8xbf16, #tpu.memory_space<vmem>>, vector<1x1x8x8xbf16>
    %72 = vector.shape_cast %71 : vector<1x1x8x8xbf16> to vector<8x8xbf16>
    %73 = vector.shape_cast %70 : vector<8x8xbf16> to vector<1x1x8x8xbf16>
    tpu.vector_store %arg7[%c0_50, %c3_51, %c0_52, %c0_53], %73 {strides = array<i32>} : memref<1x4x8x8xbf16, #tpu.memory_space<vmem>>, vector<1x1x8x8xbf16>,
    %74 = vector.extract_strided_slice %29 {offsets = [0, 88], sizes = [8, 8], strides = [1, 1]} : vector<8x96xbf16> to vector<8x8xbf16>
    %c0_54 = arith.constant 0 : index
    %c3_55 = arith.constant 3 : index
    %c0_56 = arith.constant 0 : index
    %c0_57 = arith.constant 0 : index
    %75 = vector.load %arg8[%c0_54, %c3_55, %c0_56, %c0_57] : memref<1x4x8x8xbf16, #tpu.memory_space<vmem>>, vector<1x1x8x8xbf16>
    %76 = vector.shape_cast %75 : vector<1x1x8x8xbf16> to vector<8x8xbf16>
    %77 = vector.shape_cast %74 : vector<8x8xbf16> to vector<1x1x8x8xbf16>
    tpu.vector_store %arg8[%c0_54, %c3_55, %c0_56, %c0_57], %77 {strides = array<i32>} : memref<1x4x8x8xbf16, #tpu.memory_space<vmem>>, vector<1x1x8x8xbf16>,
    return
  }
  func.func @transform_0(%arg0: i32, %arg1: i32) -> (i32, i32, i32) {
    %c0_i32 = arith.constant 0 : i32
    %c0_i32_0 = arith.constant 0 : i32
    return %arg0, %arg1, %c0_i32 : i32, i32, i32
  }
  func.func @transform_1(%arg0: i32, %arg1: i32) -> (i32, i32) {
    %c0_i32 = arith.constant 0 : i32
    %c0_i32_0 = arith.constant 0 : i32
    %c0_i32_1 = arith.constant 0 : i32
    return %c0_i32, %c0_i32_0 : i32, i32
  }
  func.func @transform_2(%arg0: i32, %arg1: i32) -> (i32, i32) {
    %c0_i32 = arith.constant 0 : i32
    %c0_i32_0 = arith.constant 0 : i32
    %c0_i32_1 = arith.constant 0 : i32
    return %c0_i32, %c0_i32_0 : i32, i32
  }
  func.func @transform_3(%arg0: i32, %arg1: i32) -> (i32, i32) {
    %c0_i32 = arith.constant 0 : i32
    %c0_i32_0 = arith.constant 0 : i32
    %c0_i32_1 = arith.constant 0 : i32
    return %c0_i32, %c0_i32_0 : i32, i32
  }
  func.func @transform_4(%arg0: i32, %arg1: i32) -> (i32, i32, i32, i32) {
    %c0_i32 = arith.constant 0 : i32
    %c0_i32_0 = arith.constant 0 : i32
    %c0_i32_1 = arith.constant 0 : i32
    return %arg0, %c0_i32, %arg1, %c0_i32_0 : i32, i32, i32, i32
  }
  func.func @transform_5(%arg0: i32, %arg1: i32) -> (i32, i32, i32, i32) {
    %c0_i32 = arith.constant 0 : i32
    %c0_i32_0 = arith.constant 0 : i32
    %c0_i32_1 = arith.constant 0 : i32
    return %arg0, %c0_i32, %arg1, %c0_i32_0 : i32, i32, i32, i32
  }
  func.func @transform_6(%arg0: i32, %arg1: i32) -> (i32, i32, i32, i32) {
    %c0_i32 = arith.constant 0 : i32
    %c0_i32_0 = arith.constant 0 : i32
    %c0_i32_1 = arith.constant 0 : i32
    return %arg0, %c0_i32, %arg1, %c0_i32_0 : i32, i32, i32, i32
  }
}

</mosaic_0001>

<bundles_post_ra>
// kernel: tpu_custom_call.1
= control target key start
LH: loop header
LB: loop body
LE: loop exit
PB: predicated region body
PF: predicated region fallthrough
CT: control target
= control target key end

     0   :  { %s1393_s0 = inlined_call_operand.hbm [shape: f32[2,8,32], index: 0, kind: input, shape index: {}]   ;;  %s1394_s1 = inlined_call_operand.vmem [shape: f32[1,32], index: 1, kind: input, shape index: {}]   ;;  %s1395_s2 = inlined_call_operand.hbm [shape: bf16[32,96], index: 2, kind: input, shape index: {}]   ;;  %s1396_s3 = inlined_call_operand.vmem [shape: f32[1,96], index: 3, kind: input, shape index: {}]   ;;  %s1397_s4 = inlined_call_operand.hbm [shape: bf16[2,4,8,8], index: 4, kind: output, shape index: {0}]   ;;  %s1398_s5 = inlined_call_operand.hbm [shape: bf16[2,4,8,8], index: 5, kind: output, shape index: {1}]   ;;  %s1399_s6 = inlined_call_operand.hbm [shape: bf16[2,4,8,8], index: 6, kind: output, shape index: {2}]  }
   0x1   :  { %1404 = sst [smem:[#allocation17_spill]] %s1395_s2 }
   0x2   :  { %12 = vsyncpa [#allocation3], 0 }
   0x3   :  { %14 = vsyncpa [#allocation3 + $0x1], 0 }
   0x4   :  { %15 = vsyncpa [#allocation6], 0 }
   0x5   :  { %16 = vsyncpa [#allocation4], 0 }
   0x6   :  { %18 = vsyncpa [#allocation4 + $0x1], 0 }
   0x7   :  { %19 = vsyncpa [#allocation9], 0 }
   0x8   :  { %21 = vsyncpa [#allocation9 + $0x1], 0  ;;  %s1099_s21 = smov 0   ;;  %s1101_s22 = smov 0  }
   0x9   :  { %s1103_s23 = smov 0   ;;  %s1105_s24 = smov 0  }
   0xa   :  { %s1107_s25 = smov 0   ;;  %s1109_s26 = smov 0  }
   0xb LB: > { %1405 = sst [smem:[#allocation15_spill]] %s1037_s25  ;;  %s1130_s27 = sadd.s32 4294967295, %s1041_s26   ;;  %s1041_s26 = sphi %s1109_s26, %s27_s26   ;;  %s1037_s25 = sphi %s1107_s25, %s1422_s25   ;;  %s1033_s24 = sphi %s1105_s24, %s1421_s24   ;;  %s1029_s23 = sphi %s1103_s23, %s1425_s23   ;;  %s1025_s22 = sphi %s1101_s22, %s1424_s22   ;;  %s1021_s21 = sphi %s1099_s21, %s1423_s21  }
   0xc   : > { %s1400_s28 = sadd.s32 4294967294, %s1041_s26   ;;  %p61_p0 = scmp.ne.s32.totalorder %s1025_s22, %s1021_s21 }
   0xd   : > { %p1403_p1 = scmp.eq.s32.totalorder %s1130_s27, 0  ;;  %p156_p3 = scmp.eq.s32.totalorder %s1400_s28, 1 }
   0xe   : > { %p692_p5 = scmp.ge.s32.totalorder %s1041_s26, 1  ;;  %p219_p7 = scmp.lt.s32.totalorder %s1041_s26, 3 }
   0xf   : > { %p1141_p4 = por %p1403_p1, %p61_p0  ;;  %p1146_p6 = por %p156_p3, %p61_p0 }
  0x10   : > { %p1151_p8 = pnand %p692_p5, %p219_p7  ;;  %s1043_s8 = smov [#allocation5]  }
  0x11   : > { %s1407_s30 = scalar_select %p1146_p6, 1, 0 }
  0x12   : > { %s234_s9 = sshll.u32 %s1043_s8, 4  ;;  %p756_p9 = pneg %p1151_p8  ;;  %s235_s9 = int_to_ptr.vmem [resolvable:$true] %s234_s9 }
  0x13   : > { %s39_s11 = sadd.s32 1, %s1037_s25  ;;  %s858_s12 = scalar_lea.vmem %s235_s9, 256 }
  0x14   : > { %p1160_p11 = pnand %p756_p9, %p1403_p1  ;;  %p859_p13 = scmp.ne.s32.totalorder %s235_s9, %s858_s12 }
  0x15   : > { %p866_p5 = scmp.lt.s32.totalorder %s235_s9, %s235_s9  ;;  %p867_p7 = scmp.lt.s32.totalorder %s858_s12, %s858_s12 }
  0x16   : > { %p849_p12 = pneg %p1160_p11 }
  0x17   : > { %p868_p2 = por %p867_p7, %p866_p5 }
  0x18   : > { %p861_p0 = pnand %p859_p13, %p849_p12 }
  0x1a   : > { %p862_p3 = pneg %p861_p0 }
  0x1c   : > { %p869_p6 = pnand %p868_p2, %p862_p3 }
  0x1e   : > { %872 = shalt.err (!%p869_p6)
}
  0x1f   : > { %s1044_s13 = smov 64   ;;  %s1045_s14 = smov 4  }
  0x20   : > { %s1410_s2 = sld [smem:[#allocation17_spill]]  ;;  %p41_p2 = scmp.ge.s32.totalorder %s39_s11, 2 }
  0x21   : > { %s48_s17 = sadd.s32 1, %s1029_s23  ;;  %p55_p6 = scmp.ne.s32.totalorder %s1029_s23, %s1025_s22 }
  0x22   : > { %p56_p9 = scmp.eq.s32.totalorder %s1041_s26, 0  ;;  %s1427_s11 = smov (%p41_p2, %s39_s11), 0 }
  0x23   : > { %1411 = sst [smem:[#allocation16_spill]] %s1427_s11  ;;  %p1413_p13 = scmp.eq.s32.totalorder %s1130_s27, 1 }
  0x24   : > { %p1178_p12 = por %p56_p9, %p55_p6  ;;  %s43_s20 = ssub.s32 %s1037_s25, %s1427_s11 }
  0x25   : > { %p1184_p0 = por %p1413_p13, %p55_p6  ;;  %p775_p3 = scmp.lt.s32.totalorder %s1041_s26, 2 }
  0x26   : > { %759 = dma.hbm_to_vmem [thread:$0]  (!%p1160_p11), %s1410_s2, 256, %s235_s9, [#allocation6], %s1044_s13, %s1044_s13, %s1045_s14  }
  0x27   : > { %p46_p11 = scmp.eq.s32.totalorder %s43_s20, 0  ;;  %s251_s8 = sand.u32 1, %s1029_s23  }
  0x28   : > { %s695_s9 = sshll.u32 %s251_s8, 3  ;;  %s696_s12 = sshll.u32 %s1037_s25, 7 }
  0x29   : > { %s1193_s10 = scalar_select %p46_p11, %s1029_s23, %s48_s17  }
  0x2a   : > { %s261_s15 = scalar_lea.hbm %s1393_s0, %s696_s12  ;;  %s255_s16 = scalar_lea.vmem [#allocation2], %s695_s9 }
  0x2b   : > { %s263_s28 = sshll.u32 %s255_s16, 4  ;;  %p1201_p5 = pnand %p775_p3, %p1178_p12  ;;  %s264_s28 = int_to_ptr.vmem [resolvable:$true] %s263_s28 }
  0x2c   : > { %s252_s11 = scalar_lea.sflag [#allocation3], %s251_s8  ;;  %s886_s20 = scalar_lea.vmem %s264_s28, 128 }
  0x2d   : > { %p875_p7 = pneg %p1201_p5  ;;  %p887_p2 = scmp.ne.s32.totalorder %s264_s28, %s886_s20 }
  0x2e   : > { %s1046_s17 = smov [#allocation2]  }
  0x2f   : > { %p889_p6 = pnand %p887_p2, %p875_p7  ;;  %s891_s25 = sshll.u32 %s1046_s17, 4  ;;  %s892_s25 = int_to_ptr.vmem [resolvable:$false] %s891_s25 }
  0x30   : > { %s893_s12 = scalar_lea.vmem %s892_s25, 256  ;;  %p894_p13 = scmp.lt.s32.totalorder %s264_s28, %s892_s25 }
  0x31   : > { %p890_p9 = pneg %p889_p6  ;;  %p895_p11 = scmp.lt.s32.totalorder %s893_s12, %s886_s20 }
  0x33   : > { %p896_p10 = por %p895_p11, %p894_p13 }
  0x35   : > { %p897_p1 = pnand %p896_p10, %p890_p9 }
  0x37   : > { %900 = shalt.err (!%p897_p1)
}
  0x38   : > { %763 = dma.hbm_to_vmem [thread:$0]  (!%p1201_p5), %s261_s15, 128, %s264_s28, %s252_s11  }
  0x39   : > { %272 = sbr.rel (%p1151_p8) target bundleno = 755 (0x2f3), region = 36  ;;  %s1212_s18 = sand.u32 (!%p1151_p8), 1, %s1025_s22  }
  0x3a   : > { %s698_s8 = sshll.u32 (!%p1151_p8), %s1212_s18, 3  ;;  %s275_s9 = scalar_lea.sflag (!%p1151_p8), [#allocation3], %s1212_s18 }
  0x3b   : > { %s278_s13 = scalar_lea.vmem (!%p1151_p8), [#allocation2], %s698_s8 }
  0x3e   : > { %1004 = dma.done.wait (%p1141_p4), %s275_s9, 128  }
  0x3f   : > { %1006 = vsyncadd (%p1141_p4), %s275_s9, 4294967168  ;;  %p1416_p1 = scmp.eq.s32.totalorder %s1130_s27, 0 }
  0x41   : > { %1008 = dma.done.wait (%p1416_p1), [#allocation6], 256   ;;  %p1417_p10 = pmov %p1416_p1 }
  0x42   : > { %vm324_vm0 = vcmask 261120   ;;  %v322_v0 = vld [vmem:[%s278_s13] sm:$0xff]  ;;  %v843_v7 = vld [vmem:[#allocation5 + $0x8] sm:$0xff]   ;;  %v1047_v8 = vmov 0.0   ;;  %vm1048_vm1 = vmmov 0   ;;  %v844_v9 = vld [vmem:[#allocation5] sm:$0xff]  }
  0x43   : > { %1010 = vsyncadd (%p1417_p10), [#allocation6], 4294967040  ;;  %v325_v1 = vsel %vm324_vm0, %v322_v0, 0.0  ;;  %736 = vmatprep.subr.bf16.mxu0 %v1047_v8  ;;  %740 = vmatprep.mubr.msk.bf16.mxu0 %vm1048_vm1, %v1047_v8  ;;  %v703_v14 = vld [vmem:[%s1394_s1] ss:$0 sm:$0xff]  ;;  %s1234_s7 = sshll.u32 %s1212_s18, 4 }
  0x44   : > { %326 = vadd.xlane.f32.xlu0 %v325_v1  ;;  %737 = vmatpush3.bf16.msra.mxu0 %v843_v7  ;;  %v704_v18 = vld [vmem:[%s1396_s3] ss:$0 sm:$0xff]  ;;  %vm414_vm2 = vcmask 60416   ;;  %s1049_s11 = smov 80   ;;  %s1050_s14 = smov 96  }
  0x45   : > { %738 = vmatprep.subr.bf16.mxu0 %v1047_v8  ;;  %s1237_s15 = scalar_lea.vmem [#allocation7], %s1234_s7  ;;  %s1051_s16 = smov 104  }
  0x46   : > { %s1052_s20 = smov 88   ;;  %s1053_s17 = smov 72  }
  0x47   : > { %s1054_s12 = smov 64   ;;  %s1055_s8 = smov 120  }
  0x48   : > { %739 = vmatpush3.bf16.msra.mxu0 %v844_v9  ;;  %s1056_s9 = smov 56   ;;  %s1057_s13 = smov 112  }
  0x49   : > { %s1058_s2 = smov 48   ;;  %s1059_s25 = smov 40  }
  0x4a   : > { %s313_s28 = scalar_lea.vmem [#allocation8], %s1234_s7 }
  0x4b   : > { %s514_s29 = sshll.u32 %s313_s28, 4  ;;  %s1252_s29 = int_to_ptr.vmem [resolvable:$true] %s514_s29 }
  0xcd   : > { %v327_v2 = vpop.xlane.xlu0 %326 }
  0xce   : > { %v329_v3 = vmul.f32 0.03125, %v327_v2 }
  0xd0   : > { %v330_v4 = vsub.f32 %v322_v0, %v329_v3 }
  0xd2   : > { %v331_v5 = vmul.f32 %v330_v4, %v330_v4 }
  0xd4   : > { %v332_v6 = vsel %vm324_vm0, %v331_v5, 0.0 }
  0xd5   : > { %333 = vadd.xlane.f32.xlu0 %v332_v6 }
 0x15e   : > { %v334_v10 = vpop.xlane.xlu0 %333 }
 0x15f   : > { %v335_v11 = vmul.f32 0.03125, %v334_v10 }
 0x161   : > { %v336_v12 = vadd.f32 1e-05, %v335_v11 }
 0x163   : > { %845 = vrsqrt.f32 %v336_v12 }
 0x170   : > { %v846_v13 = vpop.eup %845 }
 0x171   : > { %v338_v15 = vmul.f32 %v846_v13, %v330_v4 }
 0x173   : > { %v345_v16 = vmul.f32 %v703_v14, %v338_v15 }
 0x175   : > { %v346_v17 = vpack.c.bf16 %v345_v16, %v345_v16 }
 0x177   : > { %741 = vmatmul.mubr.msk.bf16.vlgmr.msra.gmra.mxu0 %vm324_vm0, %v346_v17 }
 0x237   : > { %v407_v19 = vpop.f32.mrf.mxu0 }
 0x238   : > { %v408_v20 = vadd.f32 %v704_v18, %v407_v19 }
 0x239   : > { %v742_v21 = vpop.f32.mrf.mxu0 }
 0x23a   : > { %v413_v22 = vpack.c.bf16 %v408_v20, %v408_v20 }
 0x23b   : > { %v410_v23 = vpop.f32.mrf.mxu0 }
 0x23c   : > { %447 = vrot.lane.b32.xlu0 %v413_v22, %s1049_s11  ;;  %419 = vrot.lane.b32.xlu1 %v413_v22, %s1050_s14  ;;  %415 = vst.msk [vmem:[%s1237_s15] sm:$0xf] %vm414_vm2, %v413_v22  ;;  %s477_s11 = sand.u32 1, %s1130_s27   ;;  %s1247_s14 = sshll.u32 %s1033_s24, 8 }
 0x23d   : > { %v743_v24 = vpop.f32.mrf.mxu0  ;;  %s1261_s24 = scalar_lea.sflag [#allocation9], %s477_s11  ;;  %s901_s27 = scalar_lea.vmem %s1252_s29, 256 }
 0x23e   : > { %p902_p4 = scmp.ne.s32.totalorder %s1252_s29, %s901_s27 }
 0x240   : > { %457 = vrot.lane.b32.xlu0 %v413_v22, %s1051_s16  ;;  %432 = vrot.lane.b32.xlu1 %v413_v22, %s1052_s20  ;;  %p903_p8 = pnand %p902_p4, %p1184_p0 }
 0x242   : > { %p904_p12 = pneg %p903_p8 }
 0x244   : > { %462 = vrot.lane.b32.xlu1 %v413_v22, %s1053_s17  ;;  %s1258_s17 = scalar_lea.hbm %s1398_s5, %s1247_s14 }
 0x248   : > { %423 = vrot.lane.b32.xlu1 %v413_v22, %s1054_s12 }
 0x24c   : > { %427 = vrot.lane.b32.xlu1 %v413_v22, %s1055_s8  ;;  %s1060_s8 = smov [#allocation8]  }
 0x250   : > { %437 = vrot.lane.b32.xlu1 %v413_v22, %s1056_s9  ;;  %s905_s9 = sshll.u32 %s1060_s8, 4  ;;  %s906_s9 = int_to_ptr.vmem [resolvable:$false] %s905_s9 }
 0x251   : > { %p908_p3 = scmp.lt.s32.totalorder %s1252_s29, %s906_s9 }
 0x254   : > { %442 = vrot.lane.b32.xlu1 %v413_v22, %s1057_s13  ;;  %s907_s13 = scalar_lea.vmem %s906_s9, 512 }
 0x255   : > { %p909_p5 = scmp.lt.s32.totalorder %s907_s13, %s901_s27 }
 0x257   : > { %p910_p7 = por %p909_p5, %p908_p3 }
 0x258   : > { %452 = vrot.lane.b32.xlu1 %v413_v22, %s1058_s2 }
 0x259   : > { %p911_p2 = pnand %p910_p7, %p904_p12 }
 0x25c   : > { %467 = vrot.lane.b32.xlu1 %v413_v22, %s1059_s25 }
 0x2ae   : > { %v448_v25 = vpop.permute.xlu0 %447  ;;  %v420_v26 = vpop.permute.xlu1 %419 }
 0x2af   : > { %713 = vst.msk [vmem:[%s313_s28 + $0x8] sm:$0xf] %vm414_vm2, %v448_v25  ;;  %422 = vst.msk [vmem:[%s313_s28] sm:$0xf] %vm414_vm2, %v420_v26 }
 0x2b2   : > { %v458_v27 = vpop.permute.xlu0 %457  ;;  %v433_v28 = vpop.permute.xlu1 %432 }
 0x2b3   : > { %715 = vst.msk [vmem:[%s1237_s15 + $0xc] sm:$0xf] %vm414_vm2, %v458_v27  ;;  %710 = vst.msk [vmem:[%s313_s28 + $0x4] sm:$0xf] %vm414_vm2, %v433_v28 }
 0x2b6   : > { %v463_v29 = vpop.permute.xlu1 %462 }
 0x2b7   : > { %716 = vst.msk [vmem:[%s313_s28 + $0xc] sm:$0xf] %vm414_vm2, %v463_v29 }
 0x2b8   : > { %914 = shalt.err (!%p911_p2)
}
 0x2b9   : > { %s915_s2 = scalar_lea.hbm %s1258_s17, 256  ;;  %s919_s11 = scalar_lea.hbm %s1398_s5, 512 }
 0x2ba   : > { %p916_p6 = scmp.ne.s32.totalorder %s1258_s17, %s915_s2  ;;  %p920_p11 = scmp.lt.s32.totalorder %s1258_s17, %s1398_s5 }
 0x2bb   : > { %p921_p1 = scmp.lt.s32.totalorder %s919_s11, %s915_s2 }
 0x2bc   : > { %p917_p9 = pnand %p916_p6, %p1184_p0 }
 0x2bd   : > { %p922_p10 = por %p921_p1, %p920_p11 }
 0x2be   : > { %p918_p13 = pneg %p917_p9 }
 0x2c0   : > { %p923_p4 = pnand %p922_p10, %p918_p13 }
 0x2c2   : > { %926 = shalt.err (!%p923_p4)
}
 0x2c3   : > { %s1061_s27 = smov 4   ;;  %v424_v30 = vpop.permute.xlu1 %423  ;;  %s1288_s8 = scalar_lea.vmem [#allocation10], %s1234_s7 }
 0x2c4   : > { %751 = dma.vmem_to_hbm [thread:$0]  (%p1184_p0), %s1252_s29, 256, %s1258_s17, %s1261_s24, %s1054_s12, %s1054_s12, %s1061_s27  }
 0x2c5   : > { %426 = vst.msk [vmem:[%s1288_s8] sm:$0xf] %vm414_vm2, %v424_v30  ;;  %s497_s9 = sshll.u32 %s1237_s15, 4  ;;  %s1303_s7 = scalar_lea.hbm %s1397_s4, %s1247_s14  ;;  %s1297_s9 = int_to_ptr.vmem [resolvable:$true] %s497_s9 }
 0x2c6   : > { %s473_s29 = scalar_lea.sflag [#allocation4], %s1212_s18  ;;  %s927_s17 = scalar_lea.vmem %s1297_s9, 256 }
 0x2c7   : > { %v428_v31 = vpop.permute.xlu1 %427  ;;  %p928_p8 = scmp.ne.s32.totalorder %s1297_s9, %s927_s17  ;;  %s1062_s25 = smov [#allocation7]  }
 0x2c8   : > { %709 = vst.msk [vmem:[%s1237_s15 + $0x4] sm:$0xf] %vm414_vm2, %v428_v31  ;;  %s931_s28 = sshll.u32 %s1062_s25, 4  ;;  %s932_s28 = int_to_ptr.vmem [resolvable:$false] %s931_s28 }
 0x2c9   : > { %p929_p12 = pnand %p928_p8, %p1184_p0  ;;  %s933_s11 = scalar_lea.vmem %s932_s28, 512 }
 0x2ca   : > { %p934_p5 = scmp.lt.s32.totalorder %s1297_s9, %s932_s28  ;;  %p935_p7 = scmp.lt.s32.totalorder %s933_s11, %s927_s17 }
 0x2cb   : > { %v438_v32 = vpop.permute.xlu1 %437  ;;  %p930_p3 = pneg %p929_p12 }
 0x2cc   : > { %711 = vst.msk [vmem:[%s1288_s8 + $0x4] sm:$0xf] %vm414_vm2, %v438_v32  ;;  %p936_p2 = por %p935_p7, %p934_p5 }
 0x2ce   : > { %p937_p6 = pnand %p936_p2, %p930_p3 }
 0x2cf   : > { %v443_v33 = vpop.permute.xlu1 %442 }
 0x2d0   : > { %712 = vst.msk [vmem:[%s1237_s15 + $0x8] sm:$0xf] %vm414_vm2, %v443_v33 }
 0x2d1   : > { %940 = shalt.err (!%p937_p6)
}
 0x2d2   : > { %s941_s15 = scalar_lea.hbm %s1303_s7, 256  ;;  %s945_s20 = scalar_lea.hbm %s1397_s4, 512 }
 0x2d3   : > { %p942_p9 = scmp.ne.s32.totalorder %s1303_s7, %s941_s15  ;;  %p946_p1 = scmp.lt.s32.totalorder %s1303_s7, %s1397_s4 }
 0x2d4   : > { %p947_p10 = scmp.lt.s32.totalorder %s945_s20, %s941_s15 }
 0x2d5   : > { %p943_p13 = pnand %p942_p9, %p1184_p0 }
 0x2d6   : > { %p948_p4 = por %p947_p10, %p946_p1 }
 0x2d7   : > { %p944_p11 = pneg %p943_p13 }
 0x2d9   : > { %p949_p8 = pnand %p948_p4, %p944_p11 }
 0x2db   : > { %952 = shalt.err (!%p949_p8)
}
 0x2dc   : > { %750 = dma.vmem_to_hbm [thread:$0]  (%p1184_p0), %s1297_s9, 256, %s1303_s7, %s473_s29, %s1054_s12, %s1054_s12, %s1061_s27   ;;  %v453_v34 = vpop.permute.xlu1 %452 }
 0x2dd   : > { %s531_s17 = sshll.u32 %s1288_s8, 4  ;;  %714 = vst.msk [vmem:[%s1288_s8 + $0x8] sm:$0xf] %vm414_vm2, %v453_v34  ;;  %s1340_s11 = scalar_lea.hbm %s1399_s6, %s1247_s14  ;;  %s1334_s17 = int_to_ptr.vmem [resolvable:$true] %s531_s17 }
 0x2de   : > { %s953_s15 = scalar_lea.vmem %s1334_s17, 256  ;;  %s1063_s9 = smov [#allocation10]  }
 0x2df   : > { %p954_p12 = scmp.ne.s32.totalorder %s1334_s17, %s953_s15  ;;  %s957_s7 = sshll.u32 %s1063_s9, 4  ;;  %s958_s7 = int_to_ptr.vmem [resolvable:$false] %s957_s7 }
 0x2e0   : > { %v468_v35 = vpop.permute.xlu1 %467  ;;  %s959_s29 = scalar_lea.vmem %s958_s7, 512  ;;  %p960_p7 = scmp.lt.s32.totalorder %s1334_s17, %s958_s7 }
 0x2e1   : > { %717 = vst.msk [vmem:[%s1288_s8 + $0xc] sm:$0xf] %vm414_vm2, %v468_v35  ;;  %p955_p3 = pnand %p954_p12, %p1184_p0  ;;  %p961_p2 = scmp.lt.s32.totalorder %s959_s29, %s953_s15 }
 0x2e3   : > { %p956_p5 = pneg %p955_p3  ;;  %p962_p6 = por %p961_p2, %p960_p7 }
 0x2e5   : > { %p963_p9 = pnand %p962_p6, %p956_p5 }
 0x2e7   : > { %966 = shalt.err (!%p963_p9)
}
 0x2e8   : > { %s967_s14 = scalar_lea.hbm %s1340_s11, 256  ;;  %s971_s16 = scalar_lea.hbm %s1399_s6, 512 }
 0x2e9   : > { %p968_p13 = scmp.ne.s32.totalorder %s1340_s11, %s967_s14  ;;  %p972_p10 = scmp.lt.s32.totalorder %s1340_s11, %s1399_s6 }
 0x2ea   : > { %p973_p4 = scmp.lt.s32.totalorder %s971_s16, %s967_s14 }
 0x2eb   : > { %p969_p11 = pnand %p968_p13, %p1184_p0 }
 0x2ec   : > { %p974_p8 = por %p973_p4, %p972_p10 }
 0x2ed   : > { %p970_p1 = pneg %p969_p11 }
 0x2ef   : > { %p975_p12 = pnand %p974_p8, %p970_p1 }
 0x2f1   : > { %978 = shalt.err (!%p975_p12)
}
 0x2f2   : > { %752 = dma.vmem_to_hbm [thread:$0]  (%p1184_p0), %s1334_s17, 256, %s1340_s11, %s1261_s24, %s1054_s12, %s1054_s12, %s1061_s27  }
 0x2f3 PF: > { %s546_s2 = sand.u32 1, %s1021_s21   ;;  %p1418_p3 = scmp.ne.s32.totalorder %s1407_s30, 0 }
 0x2f4   : > { %p1419_p5 = scmp.ge.s32.totalorder %s1041_s26, 2  ;;  %s547_s25 = scalar_lea.sflag [#allocation4], %s546_s2 }
 0x2f6   : > { %p765_p7 = pnand %p1419_p5, %p1418_p3 }
 0x2f8   : > { %p766_p2 = pneg %p765_p7 }
 0x2fa   : > { %1012 = dma.done.wait (%p766_p2), %s547_s25, 256  }
 0x2fb   : > { %1014 = vsyncadd (%p766_p2), %s547_s25, 4294967040  ;;  %s1420_s19 = sadd.s32 4294967294, %s1041_s26  }
 0x2fc   : > { %s555_s28 = sand.u32 1, %s1420_s19  }
 0x2fd   : > { %s556_s15 = scalar_lea.sflag [#allocation9], %s555_s28 }
 0x2fe   : > { %1016 = dma.done.wait (%p766_p2), %s556_s15, 512  }
 0x2ff   : > { %1018 = vsyncadd (%p766_p2), %s556_s15, 4294966784  ;;  %s27_s26 = sadd.s32 1, %s1041_s26   ;;  %s1421_s24 = sld [smem:[#allocation15_spill]] }
 0x300   : > { %p24_p0 = scmp.ge.s32.totalorder %s27_s26, 4   ;;  %s1422_s25 = sld [smem:[#allocation16_spill]] }
 0x301   : > { %s1423_s21 = smov %s1025_s22  ;;  %s1424_s22 = smov %s1029_s23 }
 0x302   : > { %s1425_s23 = smov %s1193_s10  ;;  %26 = sbr.rel (!%p24_p0) target bundleno = 11 (0xb), region = 126 }
 0x307   :  { %570 = vsyncpa [#allocation3], 1 }
 0x308   :  { %572 = vsyncpa [#allocation3 + $0x1], 1 }
 0x309   :  { %573 = vsyncpa [#allocation6], 1 }
 0x30a   :  { %574 = vsyncpa [#allocation4], 1 }
 0x30b   :  { %576 = vsyncpa [#allocation4 + $0x1], 1 }
 0x30c   :  { %577 = vsyncpa [#allocation9], 1 }
 0x30d   :  { %579 = vsyncpa [#allocation9 + $0x1], 1 }

</bundles_post_ra>
